<compile_context>
chip_gen: v6e
topology: v6e:2x2x1
jax: 0.10.0
libtpu: 0.0.40
codegen_flags: <defaults>
</compile_context>

<pallas_src>
import functools
import math

import jax
import jax.numpy as jnp
from jax import lax
from jax.experimental import pallas as pl
from jax.experimental.pallas import tpu as pltpu

# Small module hyper-parameters (n_head * dim_v must equal d_model so the
# final .view(B, -1, d_model) in the PyTorch forward works).
D_MODEL = 32
DIM_K = 8
DIM_V = 8
N_HEAD = 4
N_KV = 4          # n_kv_head == n_head (torch matmul requires broadcastable heads)
B = 2
T = 8


def _mha_kernel(x_ref, wqkv_ref, wo_ref, o_ref, ctx_ref, *, n_head, dim_k, dim_v):
    """One grid step = one batch element: x_ref (T, D) -> o_ref (T, D)."""
    q_off = 0
    k_off = n_head * dim_k
    v_off = k_off + n_head * dim_k
    scale = 1.0 / math.sqrt(dim_k)

    # Single fused QKV projection: (T, D)bf16 @ (D, H*(2*dk+dv))bf16 -> f32.
    qkv = jnp.dot(x_ref[...], wqkv_ref[...], preferred_element_type=jnp.float32)

    # Tiny per-head attention core; static unroll so the LLO scheduler sees
    # the whole body.  Kept in f32 (tiles are tiny at these toy shapes; at
    # production sizes p/v would be cast to bf16 before the PV matmul).
    for h in range(n_head):
        # Scale q (the small (T, dk) tile) instead of the (T, T) score tile.
        q = qkv[:, q_off + h * dim_k: q_off + (h + 1) * dim_k] * scale
        k = qkv[:, k_off + h * dim_k: k_off + (h + 1) * dim_k]
        v = qkv[:, v_off + h * dim_v: v_off + (h + 1) * dim_v]

        # Transpose-free q @ k^T: contract the shared last dim on the MXU.
        s = lax.dot_general(q, k, dimension_numbers=(((1,), (1,)), ((), ())),
                            preferred_element_type=jnp.float32)
        s = s - jnp.max(s, axis=-1, keepdims=True)
        p = jnp.exp(s)
        p = p * pl.reciprocal(jnp.sum(p, axis=-1, keepdims=True), approx=True)

        # Store this head's context slab in place (no lane-axis concatenates).
        ctx_ref[:, h * dim_v:(h + 1) * dim_v] = jnp.dot(
            p, v, preferred_element_type=jnp.float32)

    # Fused output projection: ONE (T, H*dv) @ (H*dv, D) dot; cast the f32
    # context to bf16 only at the MXU boundary.
    o_ref[...] = jnp.dot(ctx_ref[...].astype(jnp.bfloat16), wo_ref[...],
                         preferred_element_type=jnp.float32).astype(o_ref.dtype)


def multi_head_attention(x, wq, wk, wv, wo, *, n_head=N_HEAD, n_kv_head=N_KV,
                         dim_k=DIM_K, dim_v=DIM_V):
    """x: (B, T, D) -> (B, T, D). Non-causal, no mask, no kv-cache."""
    Bv, Tv, Dv = x.shape
    assert n_kv_head == n_head, "GQA/broadcast path not implemented"
    assert n_head * dim_v == Dv, "n_head * dim_v must equal d_model"
    assert wq.shape == (Dv, n_head * dim_k)
    assert wk.shape == (Dv, n_kv_head * dim_k)
    assert wv.shape == (Dv, n_kv_head * dim_v)
    assert wo.shape == (n_head * dim_v, Dv)

    bt = Bv * Tv

    # Fuse the three projection weights into one matrix and cast the MXU
    # operands to bf16 in the wrapper (softmax math stays f32 in-kernel).
    w_qkv = jnp.concatenate([wq, wk, wv], axis=1).astype(jnp.bfloat16)
    wo_b = wo.astype(jnp.bfloat16)
    x2 = x.reshape(bt, Dv).astype(jnp.bfloat16)

    kernel = functools.partial(_mha_kernel, n_head=n_head, dim_k=dim_k,
                               dim_v=dim_v)

    out2 = pl.pallas_call(
        kernel,
        out_shape=jax.ShapeDtypeStruct((bt, Dv), x.dtype),
        grid_spec=pltpu.PrefetchScalarGridSpec(
            num_scalar_prefetch=0,
            grid=(Bv,),  # leading "parallel" axis -> both TCs on v7x
            in_specs=[
                pl.BlockSpec((Tv, Dv), lambda b: (b, 0)),       # x rows of batch b
                pl.BlockSpec(w_qkv.shape, lambda b: (0, 0)),    # full weights, constant index
                pl.BlockSpec(wo_b.shape, lambda b: (0, 0)),
            ],
            out_specs=pl.BlockSpec((Tv, Dv), lambda b: (b, 0)),
            scratch_shapes=[
                pltpu.VMEM((Tv, n_head * dim_v), jnp.float32),  # per-step context
            ],
        ),
        compiler_params=pltpu.CompilerParams(
            dimension_semantics=("parallel",),
        ),
    )(x2, w_qkv, wo_b)
    return out2.reshape(Bv, Tv, Dv)


def reference(x, wq, wk, wv, wo, *, n_head=N_HEAD, n_kv_head=N_KV,
              dim_k=DIM_K, dim_v=DIM_V):
    """Plain-JAX mirror of the PyTorch forward (defaults only)."""
    Bv, Tv, Dv = x.shape
    q = (x @ wq).reshape(Bv, Tv, n_head, dim_k).transpose(0, 2, 1, 3)
    k = (x @ wk).reshape(Bv, Tv, n_kv_head, dim_k).transpose(0, 2, 1, 3)
    v = (x @ wv).reshape(Bv, Tv, n_kv_head, dim_v).transpose(0, 2, 1, 3)
    scores = jnp.einsum("bhtd,bhsd->bhts", q, k) / math.sqrt(dim_k)
    attn = jax.nn.softmax(scores, axis=-1)
    out = jnp.einsum("bhts,bhsd->bhtd", attn, v)
    out = out.transpose(0, 2, 1, 3).reshape(Bv, Tv, n_head * dim_v)
    return out @ wo


if __name__ == "__main__":
    key = jax.random.PRNGKey(0)
    kx, kq, kk, kv, ko = jax.random.split(key, 5)

    x = jax.random.normal(kx, (B, T, D_MODEL), dtype=jnp.float32)
    # deterministic "Linear" weights in (in, out) layout, bias=False
    wq = jax.random.normal(kq, (D_MODEL, N_HEAD * DIM_K), dtype=jnp.float32) * (1.0 / math.sqrt(D_MODEL))
    wk = jax.random.normal(kk, (D_MODEL, N_KV * DIM_K),   dtype=jnp.float32) * (1.0 / math.sqrt(D_MODEL))
    wv = jax.random.normal(kv, (D_MODEL, N_KV * DIM_V),   dtype=jnp.float32) * (1.0 / math.sqrt(D_MODEL))
    wo = jax.random.normal(ko, (N_HEAD * DIM_V, D_MODEL), dtype=jnp.float32) * (1.0 / math.sqrt(N_HEAD * DIM_V))

    out = multi_head_attention(x, wq, wk, wv, wo)
    out = jax.block_until_ready(out)
    assert out.shape == (B, T, D_MODEL)

    # Compare against a bf16-consistent reference (the kernel feeds bf16
    # operands to the MXU); residual differences are f32 accumulation order,
    # the bf16 cast of the context before W_o, and the EUP approx reciprocal.
    bf = lambda a: a.astype(jnp.bfloat16).astype(jnp.float32)
    ref = reference(bf(x), bf(wq), bf(wk), bf(wv), bf(wo))
    assert jnp.allclose(out, ref, atol=2e-2, rtol=2e-2), "mismatch vs reference"

    # TODO(synk): kv_cache / return_kvs / causal-mask / flash-attn options of
    # the PyTorch forward are not exercised (forward defaults only).
    print("KERNEL_OK")
</pallas_src>

<mosaic_0001>
module attributes {stable_mosaic.version = 11 : i64} {
  func.func @_mha_kernel(%arg0: i32, %arg1: memref<8x32xbf16, #tpu.memory_space<vmem>>, %arg2: memref<32x96xbf16, #tpu.memory_space<vmem>>, %arg3: memref<32x32xbf16, #tpu.memory_space<vmem>>, %arg4: memref<8x32xf32, #tpu.memory_space<vmem>>, %arg5: memref<8x32xf32, #tpu.memory_space<vmem>>) attributes {dimension_semantics = [#tpu.dimension_semantics<parallel>], iteration_bounds = array<i64: 2>, scalar_prefetch = 0 : i64, scratch_operands = 1 : i64, tpu.core_type = #tpu.core_type<tc>, window_params = [{transform_indices = @transform_0, window_bounds = array<i64: 8, 32>}, {pipeline_mode = #tpu.pipeline_mode<synchronous>, transform_indices = @transform_1, window_bounds = array<i64: 32, 96>}, {pipeline_mode = #tpu.pipeline_mode<synchronous>, transform_indices = @transform_2, window_bounds = array<i64: 32, 32>}, {transform_indices = @transform_3, window_bounds = array<i64: 8, 32>}]} {
    %c0 = arith.constant 0 : index
    %c0_0 = arith.constant 0 : index
    %0 = vector.load %arg1[%c0, %c0_0] : memref<8x32xbf16, #tpu.memory_space<vmem>>, vector<8x32xbf16>
    %c0_1 = arith.constant 0 : index
    %c0_2 = arith.constant 0 : index
    %1 = vector.load %arg2[%c0_1, %c0_2] : memref<32x96xbf16, #tpu.memory_space<vmem>>, vector<32x96xbf16>
    %cst = arith.constant dense<0.000000e+00> : vector<8x96xf32>
    %2 = tpu.matmul %0, %1, %cst {dimension_numbers = #tpu.dot_dimension_numbers<[1], [0], [0], [1], [0, 0, 1, 1], [], []>} : vector<8x32xbf16>, vector<32x96xbf16>, vector<8x96xf32> -> vector<8x96xf32>
    %3 = vector.extract_strided_slice %2 {offsets = [0, 0], sizes = [8, 8], strides = [1, 1]} : vector<8x96xf32> to vector<8x8xf32>
    %cst_3 = arith.constant 0.353553385 : f32
    %4 = vector.broadcast %cst_3 : f32 to vector<8x8xf32>
    %5 = arith.mulf %3, %4 : vector<8x8xf32>
    %6 = vector.extract_strided_slice %2 {offsets = [0, 32], sizes = [8, 8], strides = [1, 1]} : vector<8x96xf32> to vector<8x8xf32>
    %7 = vector.extract_strided_slice %2 {offsets = [0, 64], sizes = [8, 8], strides = [1, 1]} : vector<8x96xf32> to vector<8x8xf32>
    %cst_4 = arith.constant dense<0.000000e+00> : vector<8x8xf32>
    %8 = tpu.matmul %5, %6, %cst_4 {dimension_numbers = #tpu.dot_dimension_numbers<[1], [1], [0], [0], [0, 0, 1, 0], [], []>} : vector<8x8xf32>, vector<8x8xf32>, vector<8x8xf32> -> vector<8x8xf32>
    %cst_5 = arith.constant dense<0xFF800000> : vector<8xf32>
    %9 = vector.multi_reduction <maximumf>, %8, %cst_5 [1] : vector<8x8xf32> to vector<8xf32>
    %10 = vector.shape_cast %9 : vector<8xf32> to vector<8x1xf32>
    %11 = vector.broadcast %10 : vector<8x1xf32> to vector<8x8xf32>
    %12 = arith.subf %8, %11 : vector<8x8xf32>
    %13 = math.exp %12 : vector<8x8xf32>
    %cst_6 = arith.constant dense<0.000000e+00> : vector<8xf32>
    %14 = vector.multi_reduction <add>, %13, %cst_6 [1] : vector<8x8xf32> to vector<8xf32>
    %15 = vector.shape_cast %14 : vector<8xf32> to vector<8x1xf32>
    %16 = tpu.reciprocal %15 {approx = true} : vector<8x1xf32> -> vector<8x1xf32>
    %17 = vector.broadcast %16 : vector<8x1xf32> to vector<8x8xf32>
    %18 = arith.mulf %13, %17 : vector<8x8xf32>
    %cst_7 = arith.constant dense<0.000000e+00> : vector<8x8xf32>
    %19 = tpu.matmul %18, %7, %cst_7 {dimension_numbers = #tpu.dot_dimension_numbers<[1], [0], [0], [1], [0, 0, 1, 1], [], []>} : vector<8x8xf32>, vector<8x8xf32>, vector<8x8xf32> -> vector<8x8xf32>
    %c0_8 = arith.constant 0 : index
    %c0_9 = arith.constant 0 : index
    %20 = vector.load %arg5[%c0_8, %c0_9] : memref<8x32xf32, #tpu.memory_space<vmem>>, vector<8x8xf32>
    tpu.vector_store %arg5[%c0_8, %c0_9], %19 {strides = array<i32>} : memref<8x32xf32, #tpu.memory_space<vmem>>, vector<8x8xf32>,
    %21 = vector.extract_strided_slice %2 {offsets = [0, 8], sizes = [8, 8], strides = [1, 1]} : vector<8x96xf32> to vector<8x8xf32>
    %cst_10 = arith.constant 0.353553385 : f32
    %22 = vector.broadcast %cst_10 : f32 to vector<8x8xf32>
    %23 = arith.mulf %21, %22 : vector<8x8xf32>
    %24 = vector.extract_strided_slice %2 {offsets = [0, 40], sizes = [8, 8], strides = [1, 1]} : vector<8x96xf32> to vector<8x8xf32>
    %25 = vector.extract_strided_slice %2 {offsets = [0, 72], sizes = [8, 8], strides = [1, 1]} : vector<8x96xf32> to vector<8x8xf32>
    %cst_11 = arith.constant dense<0.000000e+00> : vector<8x8xf32>
    %26 = tpu.matmul %23, %24, %cst_11 {dimension_numbers = #tpu.dot_dimension_numbers<[1], [1], [0], [0], [0, 0, 1, 0], [], []>} : vector<8x8xf32>, vector<8x8xf32>, vector<8x8xf32> -> vector<8x8xf32>
    %cst_12 = arith.constant dense<0xFF800000> : vector<8xf32>
    %27 = vector.multi_reduction <maximumf>, %26, %cst_12 [1] : vector<8x8xf32> to vector<8xf32>
    %28 = vector.shape_cast %27 : vector<8xf32> to vector<8x1xf32>
    %29 = vector.broadcast %28 : vector<8x1xf32> to vector<8x8xf32>
    %30 = arith.subf %26, %29 : vector<8x8xf32>
    %31 = math.exp %30 : vector<8x8xf32>
    %cst_13 = arith.constant dense<0.000000e+00> : vector<8xf32>
    %32 = vector.multi_reduction <add>, %31, %cst_13 [1] : vector<8x8xf32> to vector<8xf32>
    %33 = vector.shape_cast %32 : vector<8xf32> to vector<8x1xf32>
    %34 = tpu.reciprocal %33 {approx = true} : vector<8x1xf32> -> vector<8x1xf32>
    %35 = vector.broadcast %34 : vector<8x1xf32> to vector<8x8xf32>
    %36 = arith.mulf %31, %35 : vector<8x8xf32>
    %cst_14 = arith.constant dense<0.000000e+00> : vector<8x8xf32>
    %37 = tpu.matmul %36, %25, %cst_14 {dimension_numbers = #tpu.dot_dimension_numbers<[1], [0], [0], [1], [0, 0, 1, 1], [], []>} : vector<8x8xf32>, vector<8x8xf32>, vector<8x8xf32> -> vector<8x8xf32>
    %c0_15 = arith.constant 0 : index
    %c8 = arith.constant 8 : index
    %38 = vector.load %arg5[%c0_15, %c8] : memref<8x32xf32, #tpu.memory_space<vmem>>, vector<8x8xf32>
    tpu.vector_store %arg5[%c0_15, %c8], %37 {strides = array<i32>} : memref<8x32xf32, #tpu.memory_space<vmem>>, vector<8x8xf32>,
    %39 = vector.extract_strided_slice %2 {offsets = [0, 16], sizes = [8, 8], strides = [1, 1]} : vector<8x96xf32> to vector<8x8xf32>
    %cst_16 = arith.constant 0.353553385 : f32
    %40 = vector.broadcast %cst_16 : f32 to vector<8x8xf32>
    %41 = arith.mulf %39, %40 : vector<8x8xf32>
    %42 = vector.extract_strided_slice %2 {offsets = [0, 48], sizes = [8, 8], strides = [1, 1]} : vector<8x96xf32> to vector<8x8xf32>
    %43 = vector.extract_strided_slice %2 {offsets = [0, 80], sizes = [8, 8], strides = [1, 1]} : vector<8x96xf32> to vector<8x8xf32>
    %cst_17 = arith.constant dense<0.000000e+00> : vector<8x8xf32>
    %44 = tpu.matmul %41, %42, %cst_17 {dimension_numbers = #tpu.dot_dimension_numbers<[1], [1], [0], [0], [0, 0, 1, 0], [], []>} : vector<8x8xf32>, vector<8x8xf32>, vector<8x8xf32> -> vector<8x8xf32>
    %cst_18 = arith.constant dense<0xFF800000> : vector<8xf32>
    %45 = vector.multi_reduction <maximumf>, %44, %cst_18 [1] : vector<8x8xf32> to vector<8xf32>
    %46 = vector.shape_cast %45 : vector<8xf32> to vector<8x1xf32>
    %47 = vector.broadcast %46 : vector<8x1xf32> to vector<8x8xf32>
    %48 = arith.subf %44, %47 : vector<8x8xf32>
    %49 = math.exp %48 : vector<8x8xf32>
    %cst_19 = arith.constant dense<0.000000e+00> : vector<8xf32>
    %50 = vector.multi_reduction <add>, %49, %cst_19 [1] : vector<8x8xf32> to vector<8xf32>
    %51 = vector.shape_cast %50 : vector<8xf32> to vector<8x1xf32>
    %52 = tpu.reciprocal %51 {approx = true} : vector<8x1xf32> -> vector<8x1xf32>
    %53 = vector.broadcast %52 : vector<8x1xf32> to vector<8x8xf32>
    %54 = arith.mulf %49, %53 : vector<8x8xf32>
    %cst_20 = arith.constant dense<0.000000e+00> : vector<8x8xf32>
    %55 = tpu.matmul %54, %43, %cst_20 {dimension_numbers = #tpu.dot_dimension_numbers<[1], [0], [0], [1], [0, 0, 1, 1], [], []>} : vector<8x8xf32>, vector<8x8xf32>, vector<8x8xf32> -> vector<8x8xf32>
    %c0_21 = arith.constant 0 : index
    %c16 = arith.constant 16 : index
    %56 = vector.load %arg5[%c0_21, %c16] : memref<8x32xf32, #tpu.memory_space<vmem>>, vector<8x8xf32>
    tpu.vector_store %arg5[%c0_21, %c16], %55 {strides = array<i32>} : memref<8x32xf32, #tpu.memory_space<vmem>>, vector<8x8xf32>,
    %57 = vector.extract_strided_slice %2 {offsets = [0, 24], sizes = [8, 8], strides = [1, 1]} : vector<8x96xf32> to vector<8x8xf32>
    %cst_22 = arith.constant 0.353553385 : f32
    %58 = vector.broadcast %cst_22 : f32 to vector<8x8xf32>
    %59 = arith.mulf %57, %58 : vector<8x8xf32>
    %60 = vector.extract_strided_slice %2 {offsets = [0, 56], sizes = [8, 8], strides = [1, 1]} : vector<8x96xf32> to vector<8x8xf32>
    %61 = vector.extract_strided_slice %2 {offsets = [0, 88], sizes = [8, 8], strides = [1, 1]} : vector<8x96xf32> to vector<8x8xf32>
    %cst_23 = arith.constant dense<0.000000e+00> : vector<8x8xf32>
    %62 = tpu.matmul %59, %60, %cst_23 {dimension_numbers = #tpu.dot_dimension_numbers<[1], [1], [0], [0], [0, 0, 1, 0], [], []>} : vector<8x8xf32>, vector<8x8xf32>, vector<8x8xf32> -> vector<8x8xf32>
    %cst_24 = arith.constant dense<0xFF800000> : vector<8xf32>
    %63 = vector.multi_reduction <maximumf>, %62, %cst_24 [1] : vector<8x8xf32> to vector<8xf32>
    %64 = vector.shape_cast %63 : vector<8xf32> to vector<8x1xf32>
    %65 = vector.broadcast %64 : vector<8x1xf32> to vector<8x8xf32>
    %66 = arith.subf %62, %65 : vector<8x8xf32>
    %67 = math.exp %66 : vector<8x8xf32>
    %cst_25 = arith.constant dense<0.000000e+00> : vector<8xf32>
    %68 = vector.multi_reduction <add>, %67, %cst_25 [1] : vector<8x8xf32> to vector<8xf32>
    %69 = vector.shape_cast %68 : vector<8xf32> to vector<8x1xf32>
    %70 = tpu.reciprocal %69 {approx = true} : vector<8x1xf32> -> vector<8x1xf32>
    %71 = vector.broadcast %70 : vector<8x1xf32> to vector<8x8xf32>
    %72 = arith.mulf %67, %71 : vector<8x8xf32>
    %cst_26 = arith.constant dense<0.000000e+00> : vector<8x8xf32>
    %73 = tpu.matmul %72, %61, %cst_26 {dimension_numbers = #tpu.dot_dimension_numbers<[1], [0], [0], [1], [0, 0, 1, 1], [], []>} : vector<8x8xf32>, vector<8x8xf32>, vector<8x8xf32> -> vector<8x8xf32>
    %c0_27 = arith.constant 0 : index
    %c24 = arith.constant 24 : index
    %74 = vector.load %arg5[%c0_27, %c24] : memref<8x32xf32, #tpu.memory_space<vmem>>, vector<8x8xf32>
    tpu.vector_store %arg5[%c0_27, %c24], %73 {strides = array<i32>} : memref<8x32xf32, #tpu.memory_space<vmem>>, vector<8x8xf32>,
    %c0_28 = arith.constant 0 : index
    %c0_29 = arith.constant 0 : index
    %75 = vector.load %arg5[%c0_28, %c0_29] : memref<8x32xf32, #tpu.memory_space<vmem>>, vector<8x32xf32>
    %76 = arith.truncf %75 : vector<8x32xf32> to vector<8x32xbf16>
    %c0_30 = arith.constant 0 : index
    %c0_31 = arith.constant 0 : index
    %77 = vector.load %arg3[%c0_30, %c0_31] : memref<32x32xbf16, #tpu.memory_space<vmem>>, vector<32x32xbf16>
    %cst_32 = arith.constant dense<0.000000e+00> : vector<8x32xf32>
    %78 = tpu.matmul %76, %77, %cst_32 {dimension_numbers = #tpu.dot_dimension_numbers<[1], [0], [0], [1], [0, 0, 1, 1], [], []>} : vector<8x32xbf16>, vector<32x32xbf16>, vector<8x32xf32> -> vector<8x32xf32>
    %c0_33 = arith.constant 0 : index
    %c0_34 = arith.constant 0 : index
    %79 = vector.load %arg4[%c0_33, %c0_34] : memref<8x32xf32, #tpu.memory_space<vmem>>, vector<8x32xf32>
    tpu.vector_store %arg4[%c0_33, %c0_34], %78 {strides = array<i32>} : memref<8x32xf32, #tpu.memory_space<vmem>>, vector<8x32xf32>,
    return
  }
  func.func @transform_0(%arg0: i32) -> (i32, i32) {
    %c0_i32 = arith.constant 0 : i32
    %c0_i32_0 = arith.constant 0 : i32
    return %arg0, %c0_i32 : i32, i32
  }
  func.func @transform_1(%arg0: i32) -> (i32, i32) {
    %c0_i32 = arith.constant 0 : i32
    %c0_i32_0 = arith.constant 0 : i32
    %c0_i32_1 = arith.constant 0 : i32
    return %c0_i32, %c0_i32_0 : i32, i32
  }
  func.func @transform_2(%arg0: i32) -> (i32, i32) {
    %c0_i32 = arith.constant 0 : i32
    %c0_i32_0 = arith.constant 0 : i32
    %c0_i32_1 = arith.constant 0 : i32
    return %c0_i32, %c0_i32_0 : i32, i32
  }
  func.func @transform_3(%arg0: i32) -> (i32, i32) {
    %c0_i32 = arith.constant 0 : i32
    %c0_i32_0 = arith.constant 0 : i32
    return %arg0, %c0_i32 : i32, i32
  }
}

</mosaic_0001>

<bundles_post_ra>
// kernel: tpu_custom_call.1
= control target key start
LH: loop header
LB: loop body
LE: loop exit
PB: predicated region body
PF: predicated region fallthrough
CT: control target
= control target key end

     0   :  { %8 = vsyncpa [#allocation4], 0  ;;  %s1777_s0 = inlined_call_operand.hbm [shape: bf16[16,32], index: 0, kind: input, shape index: {}]   ;;  %s1778_s1 = inlined_call_operand.hbm [shape: bf16[32,96], index: 1, kind: input, shape index: {}]   ;;  %s1779_s2 = inlined_call_operand.hbm [shape: bf16[32,32], index: 2, kind: input, shape index: {}]   ;;  %s1780_s3 = inlined_call_operand.hbm [shape: f32[16,32], index: 3, kind: output, shape index: {}]  }
   0x1   :  { %10 = vsyncpa [#allocation4 + $0x1], 0 }
   0x2   :  { %11 = vsyncpa [#allocation7], 0 }
   0x3   :  { %12 = vsyncpa [#allocation5], 0 }
   0x4   :  { %14 = vsyncpa [#allocation5 + $0x1], 0  ;;  %s1532_s12 = smov 0   ;;  %s1534_s13 = smov 0  }
   0x5   :  { %s1536_s14 = smov 0   ;;  %s1538_s15 = smov 0  }
   0x6 LB: > { %s1553_s16 = sadd.s32 4294967295, %s1488_s15   ;;  %s1123_s17 = sadd.s32 4294967294, %s1488_s15   ;;  %s1488_s15 = sphi %s1538_s15, %s1802_s15   ;;  %s1484_s14 = sphi %s1536_s14, %s1801_s14   ;;  %s1480_s13 = sphi %s1534_s13, %s1800_s13   ;;  %s1476_s12 = sphi %s1532_s12, %s1799_s12  }
   0x7   : > { %p40_p0 = scmp.ne.s32.totalorder %s1480_s13, %s1476_s12  ;;  %p1781_p1 = scmp.eq.s32.totalorder %s1553_s16, 0 }
   0x8   : > { %p112_p3 = scmp.eq.s32.totalorder %s1123_s17, 1  ;;  %p1124_p5 = scmp.ge.s32.totalorder %s1488_s15, 1 }
   0x9   : > { %p1562_p4 = por %p1781_p1, %p40_p0  ;;  %p119_p7 = scmp.lt.s32.totalorder %s1488_s15, 3 }
   0xa   : > { %p1567_p6 = por %p112_p3, %p40_p0  ;;  %s1490_s21 = smov [#allocation6]  }
   0xb   : > { %s1785_s18 = scalar_select %p1562_p4, 1, 0 }
   0xc   : > { %s1786_s19 = scalar_select %p1567_p6, 1, 0 }
   0xd   : > { %p1572_p8 = pnand %p1124_p5, %p119_p7  ;;  %s131_s22 = sshll.u32 %s1490_s21, 4  ;;  %s132_s22 = int_to_ptr.vmem [resolvable:$true] %s131_s22 }
   0xe   : > { %s1491_s24 = smov [#allocation8]   ;;  %s1351_s26 = scalar_lea.vmem %s132_s22, 256 }
   0xf   : > { %s1787_s20 = scalar_select %p1572_p8, 1, 0 }
  0x10   : > { %p1247_p9 = pneg %p1572_p8  ;;  %s144_s25 = sshll.u32 %s1491_s24, 4  ;;  %s145_s25 = int_to_ptr.vmem [resolvable:$true] %s144_s25 }
  0x11   : > { %p1352_p13 = scmp.ne.s32.totalorder %s132_s22, %s1351_s26  ;;  %p1359_p5 = scmp.lt.s32.totalorder %s132_s22, %s132_s22 }
  0x12   : > { %p1581_p11 = pnand %p1247_p9, %p1781_p1  ;;  %p1360_p7 = scmp.lt.s32.totalorder %s1351_s26, %s1351_s26 }
  0x14   : > { %p1342_p12 = pneg %p1581_p11  ;;  %p1361_p10 = por %p1360_p7, %p1359_p5 }
  0x16   : > { %p1354_p0 = pnand %p1352_p13, %p1342_p12 }
  0x18   : > { %p1355_p3 = pneg %p1354_p0 }
  0x1a   : > { %p1362_p9 = pnand %p1361_p10, %p1355_p3 }
  0x1c   : > { %1365 = shalt.err (!%p1362_p9)
}
  0x1d   : > { %s1492_s27 = smov 64   ;;  %s1493_s28 = smov 4  }
  0x1e   : > { %1250 = dma.hbm_to_vmem [thread:$0]  (!%p1581_p11), %s1778_s1, 256, %s132_s22, [#allocation7], %s1492_s27, %s1492_s27, %s1493_s28  }
  0x1f   : > { %s1377_s4 = scalar_lea.vmem %s145_s25, 256  ;;  %p1385_p2 = scmp.lt.s32.totalorder %s145_s25, %s145_s25 }
  0x20   : > { %p1378_p1 = scmp.ne.s32.totalorder %s145_s25, %s1377_s4  ;;  %p1386_p6 = scmp.lt.s32.totalorder %s1377_s4, %s1377_s4 }
  0x22   : > { %p1380_p13 = pnand %p1378_p1, %p1342_p12  ;;  %p1387_p5 = por %p1386_p6, %p1385_p2 }
  0x24   : > { %p1381_p0 = pneg %p1380_p13 }
  0x26   : > { %p1388_p10 = pnand %p1387_p5, %p1381_p0 }
  0x28   : > { %1391 = shalt.err (!%p1388_p10)
}
  0x29   : > { %1253 = dma.hbm_to_vmem [thread:$0]  (!%p1581_p11), %s1779_s2, 256, %s145_s25, [#allocation7], %s1492_s27, %s1492_s27, %s1493_s28  }
  0x2a   : > { %s1604_s7 = sadd.s32 1, %s1488_s15   ;;  %s27_s8 = sadd.s32 1, %s1484_s14 }
  0x2b   : > { %s24_s9 = ssub.s32 %s1488_s15, %s1604_s7  ;;  %p34_p1 = scmp.ne.s32.totalorder %s1484_s14, %s1480_s13 }
  0x2c   : > { %p25_p2 = scmp.eq.s32.totalorder %s24_s9, 0  ;;  %p35_p6 = scmp.eq.s32.totalorder %s1488_s15, 0 }
  0x2d   : > { %p1789_p12 = scmp.eq.s32.totalorder %s1553_s16, 1  ;;  %p1264_p7 = scmp.lt.s32.totalorder %s1488_s15, 2 }
  0x2e   : > { %s1620_s11 = scalar_select %p25_p2, %s1484_s14, %s27_s8  }
  0x2f   : > { %p1614_p3 = por %p1789_p12, %p34_p1  ;;  %p36_p9 = por %p35_p6, %p34_p1 }
  0x30   : > { %s158_s17 = sand.u32 1, %s1484_s14   ;;  %s1129_s22 = sshll.u32 %s1488_s15, 6 }
  0x31   : > { %s1790_s10 = scalar_select %p1614_p3, 1, 0 }
  0x32   : > { %s1128_s21 = sshll.u32 %s158_s17, 2  ;;  %s1627_s25 = scalar_lea.hbm %s1777_s0, %s1129_s22 }
  0x33   : > { %s162_s26 = scalar_lea.vmem [#allocation3], %s1128_s21  ;;  %p1629_p11 = pnand %p1264_p7, %p36_p9 }
  0x34   : > { %s169_s27 = sshll.u32 %s162_s26, 4  ;;  %s159_s29 = scalar_lea.sflag [#allocation4], %s158_s17  ;;  %s170_s27 = int_to_ptr.vmem [resolvable:$true] %s169_s27 }
  0x35   : > { %s1392_s30 = scalar_lea.hbm %s1627_s25, 64  ;;  %p1394_p0 = pneg %p1629_p11 }
  0x36   : > { %p1393_p13 = scmp.ne.s32.totalorder %s1627_s25, %s1392_s30  ;;  %s1397_s6 = scalar_lea.hbm %s1777_s0, 128 }
  0x37   : > { %p1398_p1 = scmp.lt.s32.totalorder %s1627_s25, %s1777_s0  ;;  %p1399_p2 = scmp.lt.s32.totalorder %s1397_s6, %s1392_s30 }
  0x38   : > { %p1395_p5 = pnand %p1394_p0, %p1393_p13 }
  0x39   : > { %p1400_p6 = por %p1399_p2, %p1398_p1 }
  0x3a   : > { %p1396_p10 = pneg %p1395_p5 }
  0x3c   : > { %p1401_p12 = pnand %p1400_p6, %p1396_p10 }
  0x3e   : > { %1404 = shalt.err (!%p1401_p12)
}
  0x3f   : > { %s1405_s21 = scalar_lea.vmem %s170_s27, 64  ;;  %s1494_s17 = smov [#allocation3]  }
  0x40   : > { %p1406_p7 = scmp.ne.s32.totalorder %s170_s27, %s1405_s21  ;;  %s1410_s22 = sshll.u32 %s1494_s17, 4  ;;  %s1411_s22 = int_to_ptr.vmem [resolvable:$false] %s1410_s22 }
  0x41   : > { %s1412_s23 = scalar_lea.vmem %s1411_s22, 128  ;;  %p1413_p13 = scmp.lt.s32.totalorder %s170_s27, %s1411_s22 }
  0x42   : > { %p1408_p9 = pnand %p1406_p7, %p1394_p0  ;;  %p1414_p5 = scmp.lt.s32.totalorder %s1412_s23, %s1405_s21 }
  0x44   : > { %p1409_p3 = pneg %p1408_p9  ;;  %p1415_p4 = por %p1414_p5, %p1413_p13 }
  0x46   : > { %p1416_p8 = pnand %p1415_p4, %p1409_p3 }
  0x48   : > { %1419 = shalt.err (!%p1416_p8)
}
  0x49   : > { %1257 = dma.hbm_to_vmem [thread:$0]  (!%p1629_p11), %s1627_s25, 64, %s170_s27, %s159_s29  }
  0x4a   : > { %p1792_p10 = scmp.ne.s32.totalorder %s1787_s20, 0 }
  0x4b   : > { %s1650_s24 = sand.u32 (!%p1792_p10), 1, %s1480_s13   ;;  %p1793_p0 = scmp.ne.s32.totalorder (!%p1792_p10), %s1785_s18, 0 }
  0x4c   : > { %178 = sbr.rel (%p1792_p10) target bundleno = 1955 (0x7a3), region = 32  ;;  %s1131_s26 = sshll.u32 (!%p1792_p10), %s1650_s24, 2 }
  0x4d   : > { %s181_s30 = scalar_lea.sflag (!%p1792_p10), [#allocation4], %s1650_s24  ;;  %s184_s4 = scalar_lea.vmem (!%p1792_p10), [#allocation3], %s1131_s26 }
  0x51   : > { %1463 = dma.done.wait (%p1793_p0), %s181_s30, 64  }
  0x52   : > { %1465 = vsyncadd (%p1793_p0), %s181_s30, 4294967232  ;;  %p1794_p4 = scmp.eq.s32.totalorder %s1553_s16, 0 }
  0x54   : > { %1467 = dma.done.wait (%p1794_p4), [#allocation7], 512   ;;  %p1795_p8 = pmov %p1794_p4 }
  0x55   : > { %v1495_v0 = vmov 0.0   ;;  %vm1496_vm0 = vmmov 0   ;;  %v1320_v1 = vld [vmem:[#allocation6 + $0x8] sm:$0xff]   ;;  %v1321_v2 = vld [vmem:[#allocation6] sm:$0xff]   ;;  %v216_v3 = vld [vmem:[%s184_s4] sm:$0xf] }
  0x56   : > { %1469 = vsyncadd (%p1795_p8), [#allocation7], 4294966784  ;;  %1179 = vmatprep.subr.bf16.mxu0 %v1495_v0  ;;  %1183 = vmatprep.mubr.msk.bf16.mxu0 %vm1496_vm0, %v1495_v0  ;;  %vm233_vm1 = vcmask 261120   ;;  %s1497_s18 = smov 64   ;;  %s1498_s20 = smov 96   ;;  %vm281_vm2 = vcmask 64512  }
  0x57   : > { %1192 = vmatprep.subr.mxu1 %v1495_v0  ;;  %1194 = vmatprep.mubr.msk.f32.mxu1 %vm1496_vm0, %v1495_v0  ;;  %s1499_s25 = smov 88   ;;  %s1500_s27 = smov 120   ;;  %vm614_vm3 = vcmask 130112   ;;  %vm785_vm4 = vcmask 195712   ;;  %vm956_vm5 = vcmask 261312  }
  0x58   : > { %1180 = vmatpush3.bf16.msra.mxu0 %v1320_v1  ;;  %s1501_s28 = smov 80   ;;  %s1502_s29 = smov 72  }
  0x59   : > { %1181 = vmatprep.subr.bf16.mxu0 %v1495_v0  ;;  %s1503_s5 = smov 112   ;;  %s1504_s6 = smov 104  }
  0x5a   : > { %s1505_s8 = smov 56   ;;  %s1506_s9 = smov 40  }
  0x5b   : > { %s1507_s21 = smov 48   ;;  %s1508_s17 = smov 8  }
  0x5c   : > { %1182 = vmatpush3.bf16.msra.mxu0 %v1321_v2  ;;  %s1509_s22 = smov 16   ;;  %s1510_s23 = smov 24  }
  0x5d   : > { %1187 = vmatprep.subr.mxu0 %v1495_v0  ;;  %s1134_s26 = sshll.u32 %s1650_s24, 3  ;;  %s1154_s30 = sshll.u32 %s1553_s16, 7 }
  0x5e   : > { %s214_s4 = scalar_lea.vmem [#allocation9], %s1134_s26  ;;  %p1796_p11 = scmp.ne.s32.totalorder %s1790_s10, 0 }
  0x5f   : > { %1184 = vmatmul.mubr.msk.bf16.vlgmr.msra.gmra.mxu0 %vm233_vm1, %v216_v3  ;;  %v1322_v3 = vld [vmem:[#allocation8 + $0x8] sm:$0xff]   ;;  %s1511_s16 = smov [#allocation9]  }
  0x60   : > { %1189 = vmatprep.mubr.msk.f32.mxu0 %vm1496_vm0, %v1495_v0 }
 0x11f   : > { %v1673_v4 = vpop.f32.mrf.mxu0 }
 0x120   : > { %368 = vrot.lane.b32.xlu1 %v1673_v4, %s1497_s18  ;;  %279 = vrot.lane.b32.xlu0 %v1673_v4, %s1498_s20  ;;  %v277_v8 = vmul.f32 0.35355338, %v1673_v4  ;;  %s1034_s18 = sshll.u32 %s214_s4, 4  ;;  %s1735_s18 = int_to_ptr.vmem [resolvable:$true] %s1034_s18 }
 0x121   : > { %v1185_v5 = vpop.f32.mrf.mxu0 }
 0x123   : > { %v274_v6 = vpop.f32.mrf.mxu0 }
 0x124   : > { %447 = vrot.lane.b32.xlu1 %v1673_v4, %s1499_s25 }
 0x125   : > { %v1186_v7 = vpop.f32.mrf.mxu0 }
 0x128   : > { %445 = vrot.lane.b32.xlu1 %v277_v8, %s1500_s27  ;;  %s1733_s27 = scalar_lea.hbm %s1780_s3, %s1154_s30 }
 0x12c   : > { %618 = vrot.lane.b32.xlu1 %v1673_v4, %s1501_s28  ;;  %s1021_s28 = scalar_lea.sflag [#allocation5], %s1650_s24 }
 0x192   : > { %v369_v9 = vpop.permute.xlu1 %368  ;;  %v280_v10 = vpop.permute.xlu0 %279 }
 0x193   : > { %1188 = vmatpush3.xpose.msk.msra.mxu0 %vm281_vm2, %v280_v10  ;;  %1193 = vmatpush3.msra.mxu1 %v369_v9 }
 0x194   : > { %1197 = vmatprep.subr.mxu1 %v1495_v0  ;;  %1202 = vmatprep.subr.mxu0 %v1495_v0 }
 0x196   : > { %1190 = vmatmul.mubr.msk.f32.vlgmr.msra.gmra.mxu0 %vm281_vm2, %v277_v8  ;;  %v448_v19 = vpop.permute.xlu1 %447 }
 0x197   : > { %1204 = vmatprep.mubr.msk.f32.mxu0 %vm1496_vm0, %v1495_v0 }
 0x19a   : > { %v446_v20 = vpop.permute.xlu1 %445 }
 0x19e   : > { %v619_v21 = vpop.permute.xlu1 %618 }
 0x256   : > { %v353_v11 = vpop.f32.mrf.mxu0 }
 0x257   : > { %v357_v12 = vsel %vm281_vm2, %v353_v11, -inf }
 0x258   : > { %358 = vmax.xlane.f32.xlu0 %v357_v12  ;;  %v1191_v13 = vpop.f32.mrf.mxu0 }
 0x26e   : > { %789 = vrot.lane.b32.xlu0 %v1673_v4, %s1502_s29  ;;  %s1420_s29 = scalar_lea.vmem %s1735_s18, 128 }
 0x26f   : > { %p1421_p3 = scmp.ne.s32.totalorder %s1735_s18, %s1420_s29 }
 0x271   : > { %p1422_p1 = pnand %p1421_p3, %p1796_p11 }
 0x273   : > { %p1423_p2 = pneg %p1422_p1 }
 0x2e1   : > { %v359_v14 = vpop.xlane.xlu0 %358 }
 0x2e2   : > { %v360_v15 = vsub.f32 %v353_v11, %v359_v14 }
 0x2e4   : > { %v361_v16 = vmul.f32 1.442695, %v360_v15 }
 0x2e5   : > { %v790_v26 = vpop.permute.xlu0 %789 }
 0x2e6   : > { %1324 = vpow2.f32 %v361_v16 }
 0x2f3   : > { %v1325_v17 = vpop.eup %1324 }
 0x2f4   : > { %v363_v18 = vsel %vm281_vm2, %v1325_v17, 0.0 }
 0x2f5   : > { %364 = vadd.xlane.f32.xlu1 %v363_v18 }
 0x306   : > { %616 = vrot.lane.b32.xlu1 %v277_v8, %s1503_s5  ;;  %s1424_s5 = sshll.u32 %s1511_s16, 4  ;;  %s1425_s5 = int_to_ptr.vmem [resolvable:$false] %s1424_s5 }
 0x307   : > { %p1427_p6 = scmp.lt.s32.totalorder %s1735_s18, %s1425_s5 }
 0x30a   : > { %787 = vrot.lane.b32.xlu1 %v277_v8, %s1504_s6  ;;  %s1426_s6 = scalar_lea.vmem %s1425_s5, 256 }
 0x30b   : > { %p1428_p12 = scmp.lt.s32.totalorder %s1426_s6, %s1420_s29 }
 0x30d   : > { %p1429_p7 = por %p1428_p12, %p1427_p6 }
 0x30f   : > { %p1430_p9 = pnand %p1429_p7, %p1423_p2 }
 0x37e   : > { %v365_v22 = vpop.xlane.xlu1 %364 }
 0x37f   : > { %1326 = vrcp.f32 %v365_v22 }
 0x382   : > { %v617_v25 = vpop.permute.xlu1 %616 }
 0x386   : > { %v788_v27 = vpop.permute.xlu1 %787 }
 0x38c   : > { %v1327_v23 = vpop.eup %1326 }
 0x38d   : > { %v367_v24 = vmul.f32 %v1327_v23, %v1325_v17 }
 0x38f   : > { %1195 = vmatmul.mubr.msk.f32.vlgmr.msra.gmra.mxu1 %vm281_vm2, %v367_v24 }
 0x390   : > { %1198 = vmatpush3.xpose.msk.msra.mxu1 %vm281_vm2, %v448_v19  ;;  %1199 = vmatprep.mubr.msk.f32.mxu1 %vm1496_vm0, %v1495_v0 }
 0x391   : > { %1207 = vmatprep.subr.mxu1 %v1495_v0 }
 0x393   : > { %1200 = vmatmul.mubr.msk.f32.vlgmr.msra.gmra.mxu1 %vm281_vm2, %v446_v20 }
 0x394   : > { %1208 = vmatpush3.xpose.msk.msra.mxu1 %vm281_vm2, %v619_v21  ;;  %1209 = vmatprep.mubr.msk.f32.mxu1 %vm1496_vm0, %v1495_v0 }
 0x395   : > { %1217 = vmatprep.subr.mxu1 %v1495_v0 }
 0x397   : > { %1210 = vmatmul.mubr.msk.f32.vlgmr.msra.gmra.mxu1 %vm281_vm2, %v617_v25 }
 0x398   : > { %1218 = vmatpush3.xpose.msk.msra.mxu1 %vm281_vm2, %v790_v26  ;;  %1219 = vmatprep.mubr.msk.f32.mxu1 %vm1496_vm0, %v1495_v0 }
 0x399   : > { %1227 = vmatprep.subr.bf16.mxu1 %v1495_v0 }
 0x39b   : > { %1220 = vmatmul.mubr.msk.f32.vlgmr.msra.gmra.mxu1 %vm281_vm2, %v788_v27 }
 0x39c   : > { %1231 = vmatprep.mubr.msk.bf16.mxu1 %vm1496_vm0, %v1495_v0  ;;  %1228 = vmatpush3.bf16.msra.mxu1 %v1322_v3 }
 0x39d   : > { %1229 = vmatprep.subr.bf16.mxu1 %v1495_v0 }
 0x44f   : > { %v440_v28 = vpop.f32.mrf.mxu1 }
 0x450   : > { %444 = vst.msk [vmem:[#allocation2] sm:$0xff] %vm281_vm2, %v440_v28 }
 0x451   : > { %v1196_v29 = vpop.f32.mrf.mxu1 }
 0x453   : > { %v519_v30 = vpop.f32.mrf.mxu1 }
 0x454   : > { %v523_v31 = vsel %vm281_vm2, %v519_v30, -inf }
 0x455   : > { %524 = vmax.xlane.f32.xlu1 %v523_v31  ;;  %v1201_v32 = vpop.f32.mrf.mxu1 }
 0x457   : > { %v690_v33 = vpop.f32.mrf.mxu1 }
 0x458   : > { %v694_v34 = vsel %vm281_vm2, %v690_v33, -inf }
 0x459   : > { %695 = vmax.xlane.f32.xlu0 %v694_v34  ;;  %v1211_v35 = vpop.f32.mrf.mxu1 }
 0x45b   : > { %v861_v36 = vpop.f32.mrf.mxu1 }
 0x45c   : > { %v865_v37 = vsel %vm281_vm2, %v861_v36, -inf }
 0x45d   : > { %866 = vmax.xlane.f32.xlu1 %v865_v37  ;;  %v1221_v38 = vpop.f32.mrf.mxu1 }
 0x46e   : > { %534 = vrot.lane.b32.xlu1 %v1673_v4, %s1505_s8 }
 0x4de   : > { %v525_v39 = vpop.xlane.xlu1 %524 }
 0x4df   : > { %v526_v40 = vsub.f32 %v519_v30, %v525_v39 }
 0x4e1   : > { %v527_v41 = vmul.f32 1.442695, %v526_v40 }
 0x4e2   : > { %v696_v42 = vpop.xlane.xlu0 %695 }
 0x4e3   : > { %1328 = vpow2.f32 %v527_v41  ;;  %v697_v43 = vsub.f32 %v690_v33, %v696_v42 }
 0x4e5   : > { %v698_v44 = vmul.f32 1.442695, %v697_v43 }
 0x4e6   : > { %v867_v45 = vpop.xlane.xlu1 %866 }
 0x4e7   : > { %1330 = vpow2.f32 %v698_v44  ;;  %v868_v46 = vsub.f32 %v861_v36, %v867_v45 }
 0x4e9   : > { %v869_v47 = vmul.f32 1.442695, %v868_v46 }
 0x4ea   : > { %v535_v48 = vpop.permute.xlu1 %534 }
 0x4eb   : > { %1332 = vpow2.f32 %v869_v47  ;;  %1203 = vmatpush3.msra.mxu0 %v535_v48 }
 0x4ec   : > { %1212 = vmatprep.subr.mxu0 %v1495_v0 }
 0x4f0   : > { %v1329_v49 = vpop.eup %1328 }
 0x4f1   : > { %v529_v50 = vsel %vm281_vm2, %v1329_v49, 0.0 }
 0x4f2   : > { %530 = vadd.xlane.f32.xlu1 %v529_v50 }
 0x4f4   : > { %v1331_v51 = vpop.eup %1330 }
 0x4f5   : > { %v700_v52 = vsel %vm281_vm2, %v1331_v51, 0.0 }
 0x4f6   : > { %701 = vadd.xlane.f32.xlu1 %v700_v52 }
 0x4f8   : > { %v1333_v53 = vpop.eup %1332 }
 0x4f9   : > { %v871_v54 = vsel %vm281_vm2, %v1333_v53, 0.0 }
 0x4fa   : > { %872 = vadd.xlane.f32.xlu0 %v871_v54 }
 0x507   : > { %876 = vrot.lane.b32.xlu1 %v1673_v4, %s1506_s9 }
 0x510   : > { %705 = vrot.lane.b32.xlu0 %v1673_v4, %s1507_s21  ;;  %v1323_v4 = vld [vmem:[#allocation8] sm:$0xff]  }
 0x511   : > { %1230 = vmatpush3.bf16.msra.mxu1 %v1323_v4 }
 0x57b   : > { %v531_v55 = vpop.xlane.xlu1 %530 }
 0x57c   : > { %1334 = vrcp.f32 %v531_v55 }
 0x57f   : > { %v702_v56 = vpop.xlane.xlu1 %701 }
 0x580   : > { %1336 = vrcp.f32 %v702_v56 }
 0x583   : > { %v873_v57 = vpop.xlane.xlu0 %872  ;;  %v877_v63 = vpop.permute.xlu1 %876 }
 0x584   : > { %1338 = vrcp.f32 %v873_v57 }
 0x587   : > { %v706_v60 = vpop.permute.xlu0 %705 }
 0x589   : > { %v1335_v58 = vpop.eup %1334 }
 0x58a   : > { %v533_v59 = vmul.f32 %v1335_v58, %v1329_v49 }
 0x58c   : > { %1205 = vmatmul.mubr.msk.f32.vlgmr.msra.gmra.mxu0 %vm281_vm2, %v533_v59 }
 0x58d   : > { %v1337_v61 = vpop.eup %1336  ;;  %1213 = vmatpush3.msra.mxu0 %v706_v60  ;;  %1214 = vmatprep.mubr.msk.f32.mxu0 %vm1496_vm0, %v1495_v0 }
 0x58e   : > { %1222 = vmatprep.subr.mxu0 %v1495_v0  ;;  %v704_v62 = vmul.f32 %v1337_v61, %v1331_v51 }
 0x590   : > { %1215 = vmatmul.mubr.msk.f32.vlgmr.msra.gmra.mxu0 %vm281_vm2, %v704_v62 }
 0x591   : > { %v1339_v1 = vpop.eup %1338  ;;  %1223 = vmatpush3.msra.mxu0 %v877_v63  ;;  %1224 = vmatprep.mubr.msk.f32.mxu0 %vm1496_vm0, %v1495_v0 }
 0x592   : > { %v875_v2 = vmul.f32 %v1339_v1, %v1333_v53 }
 0x594   : > { %1225 = vmatmul.mubr.msk.f32.vlgmr.msra.gmra.mxu0 %vm281_vm2, %v875_v2 }
 0x64c   : > { %v606_v5 = vpop.f32.mrf.mxu0 }
 0x64d   : > { %611 = vrot.lane.b32.xlu1 %v606_v5, %s1508_s17 }
 0x64e   : > { %v1206_v6 = vpop.f32.mrf.mxu0 }
 0x650   : > { %v777_v7 = vpop.f32.mrf.mxu0 }
 0x651   : > { %782 = vrot.lane.b32.xlu0 %v777_v7, %s1509_s22 }
 0x652   : > { %v1216_v8 = vpop.f32.mrf.mxu0 }
 0x654   : > { %v948_v9 = vpop.f32.mrf.mxu0 }
 0x655   : > { %953 = vrot.lane.b32.xlu1 %v948_v9, %s1510_s23 }
 0x656   : > { %v1226_v10 = vpop.f32.mrf.mxu0 }
 0x6bf   : > { %v612_v11 = vpop.permute.xlu1 %611 }
 0x6c0   : > { %615 = vst.msk [vmem:[#allocation2] sm:$0xff] %vm614_vm3, %v612_v11 }
 0x6c3   : > { %v783_v0 = vpop.permute.xlu0 %782 }
 0x6c4   : > { %786 = vst.msk [vmem:[#allocation2] sm:$0xff] %vm785_vm4, %v783_v0 }
 0x6c7   : > { %v954_v12 = vpop.permute.xlu1 %953 }
 0x6c8   : > { %957 = vst.msk [vmem:[#allocation2] sm:$0xff] %vm956_vm5, %v954_v12 }
 0x6cf   : > { %v958_v13 = vld [vmem:[#allocation2] sm:$0xff] }
 0x6d0   : > { %v959_v14 = vpack.c.bf16 %v958_v13, %v958_v13 }
 0x6d2   : > { %1232 = vmatmul.mubr.msk.bf16.vlgmr.msra.gmra.mxu1 %vm233_vm1, %v959_v14 }
 0x792   : > { %v1013_v15 = vpop.f32.mrf.mxu1 }
 0x793   : > { %1019 = vst.msk [vmem:[%s214_s4] sm:$0xff] %vm233_vm1, %v1013_v15 }
 0x794   : > { %v1233_v16 = vpop.f32.mrf.mxu1 }
 0x795   : > { %1433 = shalt.err (!%p1430_p9)
}
 0x796   : > { %s1434_s8 = scalar_lea.hbm %s1733_s27, 128  ;;  %s1438_s21 = scalar_lea.hbm %s1780_s3, 256 }
 0x797   : > { %p1435_p13 = scmp.ne.s32.totalorder %s1733_s27, %s1434_s8  ;;  %p1439_p0 = scmp.lt.s32.totalorder %s1733_s27, %s1780_s3 }
 0x798   : > { %p1440_p4 = scmp.lt.s32.totalorder %s1438_s21, %s1434_s8 }
 0x799   : > { %p1436_p5 = pnand %p1435_p13, %p1796_p11 }
 0x79a   : > { %p1441_p8 = por %p1440_p4, %p1439_p0 }
 0x79b   : > { %p1437_p10 = pneg %p1436_p5 }
 0x79d   : > { %p1442_p3 = pnand %p1441_p8, %p1437_p10 }
 0x79f   : > { %1445 = shalt.err (!%p1442_p3)
}
 0x7a0   : > { %1245 = dma.vmem_to_hbm [thread:$0]  (%p1796_p11), %s1735_s18, 128, %s1733_s27, %s1021_s28   ;;  %v1016_v17 = vpop.f32.mrf.mxu1 }
 0x7a2   : > { %v1234_v18 = vpop.f32.mrf.mxu1 }
 0x7a3 PF: > { %s1046_s23 = sand.u32 1, %s1476_s12   ;;  %p1797_p1 = scmp.ne.s32.totalorder %s1786_s19, 0 }
 0x7a4   : > { %p1798_p2 = scmp.ge.s32.totalorder %s1488_s15, 2  ;;  %s1047_s26 = scalar_lea.sflag [#allocation5], %s1046_s23 }
 0x7a6   : > { %p1259_p6 = pnand %p1798_p2, %p1797_p1 }
 0x7a8   : > { %p1260_p12 = pneg %p1259_p6 }
 0x7aa   : > { %1471 = dma.done.wait (%p1260_p12), %s1047_s26, 128  }
 0x7ab   : > { %1473 = vsyncadd (%p1260_p12), %s1047_s26, 4294967168  ;;  %p17_p11 = scmp.ge.s32.totalorder %s1604_s7, 4   ;;  %s1799_s12 = smov %s1480_s13 }
 0x7ac   : > { %s1800_s13 = smov %s1484_s14  ;;  %s1801_s14 = smov %s1620_s11 }
 0x7ad   : > { %s1802_s15 = smov %s1604_s7  ;;  %19 = sbr.rel (!%p17_p11) target bundleno = 6 (0x6), region = 85 }
 0x7b2   :  { %1052 = vsyncpa [#allocation4], 1 }
 0x7b3   :  { %1054 = vsyncpa [#allocation4 + $0x1], 1 }
 0x7b4   :  { %1055 = vsyncpa [#allocation7], 1 }
 0x7b5   :  { %1056 = vsyncpa [#allocation5], 1 }
 0x7b6   :  { %1058 = vsyncpa [#allocation5 + $0x1], 1 }

</bundles_post_ra>
